<compile_context>
chip_gen: v7x
topology: tpu7x:2x2x1
jax: 0.10.0
libtpu: 0.0.40
codegen_flags: <defaults>
</compile_context>

<pallas_src>
import functools

import jax
import jax.numpy as jnp
from jax import lax
from jax.experimental import pallas as pl
from jax.experimental.pallas import tpu as pltpu


def _dtype_min(dtype):
    dtype = jnp.dtype(dtype)
    if jnp.issubdtype(dtype, jnp.floating):
        return float("-inf")
    if jnp.issubdtype(dtype, jnp.integer):
        return int(jnp.iinfo(dtype).min)
    raise TypeError(f"unsupported dtype for global max pool: {dtype}")


def _vmem_capacity_bytes():
    """Best-effort VMEM capacity query; conservative (v7x) fallback."""
    try:
        info = pltpu.get_tpu_info()
        cap = getattr(info, "vmem_capacity_bytes", None)
        if cap:
            return int(cap)
    except Exception:
        pass
    return 64 * 1024 * 1024


def _global_max_kernel(x_ref, o_ref, acc_ref, *, spatial_tile, row_strip,
                       num_spatial_blocks, tail_valid, min_val):
    """Grid = (row_blocks, spatial_blocks); spatial axis (last) is the reduction.

    tail_valid: number of valid lanes in the LAST spatial block (1..spatial_tile).
    All tail handling is static: only the single boundary 128-lane chunk is ever
    masked, and only on the last spatial step.
    """
    k = pl.program_id(1)
    n_chunks = spatial_tile // 128
    rt = acc_ref.shape[0]

    @pl.when(k == 0)
    def _init():
        acc_ref[...] = jnp.full_like(acc_ref, min_val)

    def fold_into_acc(n_full_chunks, partial_lanes):
        # Fold chunks [0, n_full_chunks) unmasked; if partial_lanes > 0, also fold
        # chunk n_full_chunks masked to its first partial_lanes lanes. Chunks
        # entirely past the tail are skipped statically. Done in row strips so the
        # live running-max stays at ~16 vregs (no register spills).
        for r0 in range(0, rt, row_strip):
            rs = min(row_strip, rt - r0)
            rows_sl = pl.ds(r0, rs)
            folded = None
            for m in range(n_full_chunks):
                chunk = x_ref[rows_sl, pl.ds(m * 128, 128)]
                folded = chunk if folded is None else jnp.maximum(folded, chunk)
            if partial_lanes > 0:
                chunk = x_ref[rows_sl, pl.ds(n_full_chunks * 128, 128)]
                lane = lax.broadcasted_iota(jnp.int32, chunk.shape, 1)
                chunk = jnp.where(lane < partial_lanes, chunk,
                                  jnp.asarray(min_val, dtype=chunk.dtype))
                folded = chunk if folded is None else jnp.maximum(folded, chunk)
            acc_ref[rows_sl, :] = jnp.maximum(acc_ref[rows_sl, :], folded)

    tail_full = tail_valid // 128
    tail_part = tail_valid % 128

    if num_spatial_blocks == 1:
        # Whole spatial extent in one block: single (possibly tail-masked) pass.
        fold_into_acc(tail_full, tail_part)
    elif tail_valid == spatial_tile:
        # Aligned spatial extent: every block is identical, never mask.
        fold_into_acc(n_chunks, 0)
    else:
        @pl.when(k < num_spatial_blocks - 1)
        def _body():
            fold_into_acc(n_chunks, 0)

        @pl.when(k == num_spatial_blocks - 1)
        def _tail():
            fold_into_acc(tail_full, tail_part)

    # Single XLU reduce per row block, on the last spatial step.
    @pl.when(k == num_spatial_blocks - 1)
    def _finalize():
        o_ref[...] = jnp.max(acc_ref[...], axis=-1, keepdims=True).astype(o_ref.dtype)


def global_max_pool(x, *, spatial_tile=None, row_tile=None):
    """Equivalent of F.max_pool3d(x, kernel_size=x.size()[2:]).view(N, C).

    x: (N, C, D, H, W) -> (N, C). Works for any number of trailing spatial dims.
    """
    N, C = int(x.shape[0]), int(x.shape[1])
    S = 1
    for d in x.shape[2:]:
        S *= int(d)
    rows = N * C

    dtype = jnp.dtype(x.dtype)
    itemsize = dtype.itemsize
    min_val = _dtype_min(dtype)

    # Free reshape (contiguous), no HBM copy.
    x2d = x.reshape(rows, S)

    pack = max(1, 4 // itemsize)        # elements per 32-bit word
    granule = 8 * pack                  # sublane granule for this dtype

    vmem_cap = _vmem_capacity_bytes()
    big_vmem = vmem_cap >= (100 << 20)  # v5e / v6e (128 MiB) vs v7x (64 MiB)

    # Per-step block byte target (dtype-independent): 32 MiB with 128 MiB VMEM,
    # 16 MiB with 64 MiB VMEM. Budget covers 2x double-buffered input + acc.
    target_block_bytes = (32 << 20) if big_vmem else (16 << 20)
    budget = int(min(0.7 * vmem_cap, 96 << 20))

    # --- Row tile: multiple of the sublane granule, clamped to (padded) rows.
    if row_tile is None:
        row_tile = 1024 if big_vmem else 512
    rt = min(granule * pl.cdiv(int(row_tile), granule),
             granule * pl.cdiv(rows, granule))

    # --- Spatial tile: fill the byte target given rt, clamped to the (padded)
    # spatial extent; multiple of 128 lanes.
    if spatial_tile is None:
        st = target_block_bytes // max(1, rt * itemsize)
    else:
        st = int(spatial_tile)
    st = min(st, 128 * pl.cdiv(S, 128))
    st = max(128, 128 * (st // 128))

    # If S fit entirely in one block and the block is still small, grow the row
    # tile toward the byte target (huge-rows / small-S regime).
    if row_tile is None or spatial_tile is None:
        pass  # (keep user intent when overridden below)
    if (rt * st * itemsize) < target_block_bytes and spatial_tile is None and row_tile is None:
        rt_want = target_block_bytes // max(1, st * itemsize)
        rt = min(granule * pl.cdiv(rows, granule),
                 max(rt, granule * (rt_want // granule)))

    # Megacore: v7x has 2 TensorCores sharing the "parallel" row axis. If the
    # current row tile leaves only a single row block, split it in two whenever
    # each half still carries >= 4 MiB of total work (harmless on 1-TC chips).
    if pl.cdiv(rows, rt) == 1 and rows >= 2 * granule:
        half = granule * pl.cdiv(pl.cdiv(rows, 2), granule)
        if half * S * itemsize >= (4 << 20):
            rt = half

    # --- Fit the double-buffered working set into the VMEM budget (safety net).
    def working_set(rt_, st_):
        return 2 * rt_ * st_ * itemsize + rt_ * 128 * itemsize

    while st > 128 and working_set(rt, st) > budget:
        st = max(128, 128 * pl.cdiv(st // 2, 128))
    while rt > granule and working_set(rt, st) > budget:
        rt = max(granule, granule * pl.cdiv(rt // 2, granule))

    grid = (pl.cdiv(rows, rt), pl.cdiv(S, st))      # rows parallel, reduction last
    num_spatial_blocks = grid[1]
    tail_valid = S - (num_spatial_blocks - 1) * st  # in 1..st (static)

    # Fold strip: keeps the live running max at ~16 vregs regardless of dtype.
    row_strip = min(rt, 128 * pack)

    in_block_bytes = rt * st * itemsize
    need = working_set(rt, st) + (4 << 20)
    vmem_limit = int(min(max(need, 32 << 20), budget + (8 << 20)))

    kernel = functools.partial(
        _global_max_kernel,
        spatial_tile=st,
        row_strip=row_strip,
        num_spatial_blocks=num_spatial_blocks,
        tail_valid=tail_valid,
        min_val=min_val,
    )

    out = pl.pallas_call(
        kernel,
        out_shape=jax.ShapeDtypeStruct((rows, 1), dtype),
        grid_spec=pltpu.PrefetchScalarGridSpec(
            num_scalar_prefetch=0,
            grid=grid,
            in_specs=[pl.BlockSpec((rt, st), lambda r, k: (r, k))],
            out_specs=pl.BlockSpec((rt, 1), lambda r, k: (r, 0)),
            scratch_shapes=[pltpu.VMEM((rt, 128), dtype)],
        ),
        compiler_params=pltpu.CompilerParams(
            dimension_semantics=("parallel", "arbitrary"),
            vmem_limit_bytes=vmem_limit,
        ),
        cost_estimate=pl.CostEstimate(
            flops=rows * S,
            transcendentals=0,
            bytes_accessed=rows * S * itemsize + rows * itemsize,
        ),
    )(x2d)

    return out.reshape(N, C)


if __name__ == "__main__":
    # GlobalMaxPool has no parameters, so nothing to initialize.
    key = jax.random.PRNGKey(0)

    # Case 1: tile-aligned shapes (single spatial block, no masking anywhere).
    N, C, D, H, W = 2, 4, 8, 8, 8
    x = jax.random.normal(key, (N, C, D, H, W), dtype=jnp.float32)
    y = jax.block_until_ready(global_max_pool(x))
    y_ref = jnp.max(x.reshape(N, C, -1), axis=-1)
    assert y.shape == (N, C), y.shape
    assert jnp.allclose(y, y_ref), "mismatch vs reference (aligned case)"

    # Case 2: ragged spatial extent + rows not a sublane multiple
    # (single spatial block whose boundary 128-lane chunk is masked).
    N2, C2, D2, H2, W2 = 2, 3, 5, 6, 7
    x2 = jax.random.normal(jax.random.PRNGKey(1), (N2, C2, D2, H2, W2),
                           dtype=jnp.float32)
    y2 = jax.block_until_ready(global_max_pool(x2))
    y2_ref = jnp.max(x2.reshape(N2, C2, -1), axis=-1)
    assert y2.shape == (N2, C2), y2.shape
    assert jnp.allclose(y2, y2_ref), "mismatch vs reference (ragged case)"

    # Case 3: multiple spatial grid steps with a ragged tail — exercises the
    # gated last-step mask path (unmasked folds for k < last, masked boundary
    # chunk only on the last step). Small spatial_tile override keeps it tiny.
    N3, C3, D3, H3, W3 = 2, 3, 9, 10, 11   # S = 990 -> 4 steps of 256, tail 222
    x3 = jax.random.normal(jax.random.PRNGKey(2), (N3, C3, D3, H3, W3),
                           dtype=jnp.float32)
    y3 = jax.block_until_ready(global_max_pool(x3, spatial_tile=256))
    y3_ref = jnp.max(x3.reshape(N3, C3, -1), axis=-1)
    assert y3.shape == (N3, C3), y3.shape
    assert jnp.allclose(y3, y3_ref), "mismatch vs reference (multi-step ragged case)"

    # Case 4: bf16 input (16-row sublane granule, packed-lane byte scaling).
    x4 = jax.random.normal(jax.random.PRNGKey(3), (2, 4, 6, 7, 5),
                           dtype=jnp.bfloat16)
    y4 = jax.block_until_ready(global_max_pool(x4))
    y4_ref = jnp.max(x4.reshape(2, 4, -1), axis=-1)
    assert y4.shape == (2, 4), y4.shape
    assert jnp.all(y4 == y4_ref), "mismatch vs reference (bf16 case)"

    print("KERNEL_OK")
</pallas_src>

<mosaic_0001>
module attributes {stable_mosaic.version = 11 : i64} {
  func.func @_global_max_kernel(%arg0: i32, %arg1: i32, %arg2: memref<8x512xf32, #tpu.memory_space<vmem>>, %arg3: memref<8x1xf32, #tpu.memory_space<vmem>>, %arg4: memref<8x128xf32, #tpu.memory_space<vmem>>) attributes {dimension_semantics = [#tpu.dimension_semantics<parallel>, #tpu.dimension_semantics<arbitrary>], iteration_bounds = array<i64: 1, 1>, scalar_prefetch = 0 : i64, scratch_operands = 1 : i64, tpu.core_type = #tpu.core_type<tc>, window_params = [{transform_indices = @transform_0, window_bounds = array<i64: 8, 512>}, {transform_indices = @transform_1, window_bounds = array<i64: 8, 1>}]} {
    %c0_i32 = arith.constant 0 : i32
    %0 = arith.cmpi eq, %arg1, %c0_i32 : i32
    %1 = arith.extui %0 : i1 to i32
    %c0_i32_0 = arith.constant 0 : i32
    %2 = arith.cmpi ne, %1, %c0_i32_0 : i32
    scf.if %2 {
      %cst = arith.constant 0xFF800000 : f32
      %16 = vector.broadcast %cst : f32 to vector<8x128xf32>
      %c0_11 = arith.constant 0 : index
      %c0_12 = arith.constant 0 : index
      %17 = vector.load %arg4[%c0_11, %c0_12] : memref<8x128xf32, #tpu.memory_space<vmem>>, vector<8x128xf32>
      tpu.vector_store %arg4[%c0_11, %c0_12], %16 {strides = array<i32>} : memref<8x128xf32, #tpu.memory_space<vmem>>, vector<8x128xf32>,
    } else {
    }
    %c0 = arith.constant 0 : index
    %c0_1 = arith.constant 0 : index
    %3 = vector.load %arg2[%c0, %c0_1] : memref<8x512xf32, #tpu.memory_space<vmem>>, vector<8x128xf32>
    %c0_2 = arith.constant 0 : index
    %c128 = arith.constant 128 : index
    %4 = vector.load %arg2[%c0_2, %c128] : memref<8x512xf32, #tpu.memory_space<vmem>>, vector<8x128xf32>
    %5 = arith.maximumf %3, %4 : vector<8x128xf32>
    %c0_3 = arith.constant 0 : index
    %c256 = arith.constant 256 : index
    %6 = vector.load %arg2[%c0_3, %c256] : memref<8x512xf32, #tpu.memory_space<vmem>>, vector<8x128xf32>
    %7 = arith.maximumf %5, %6 : vector<8x128xf32>
    %c0_4 = arith.constant 0 : index
    %c384 = arith.constant 384 : index
    %8 = vector.load %arg2[%c0_4, %c384] : memref<8x512xf32, #tpu.memory_space<vmem>>, vector<8x128xf32>
    %9 = arith.maximumf %7, %8 : vector<8x128xf32>
    %c0_5 = arith.constant 0 : index
    %c0_6 = arith.constant 0 : index
    %10 = vector.load %arg4[%c0_5, %c0_6] : memref<8x128xf32, #tpu.memory_space<vmem>>, vector<8x128xf32>
    %11 = arith.maximumf %10, %9 : vector<8x128xf32>
    %c0_7 = arith.constant 0 : index
    %c0_8 = arith.constant 0 : index
    %12 = vector.load %arg4[%c0_7, %c0_8] : memref<8x128xf32, #tpu.memory_space<vmem>>, vector<8x128xf32>
    tpu.vector_store %arg4[%c0_7, %c0_8], %11 {strides = array<i32>} : memref<8x128xf32, #tpu.memory_space<vmem>>, vector<8x128xf32>,
    %c0_i32_9 = arith.constant 0 : i32
    %13 = arith.cmpi eq, %arg1, %c0_i32_9 : i32
    %14 = arith.extui %13 : i1 to i32
    %c0_i32_10 = arith.constant 0 : i32
    %15 = arith.cmpi ne, %14, %c0_i32_10 : i32
    scf.if %15 {
      %c0_11 = arith.constant 0 : index
      %c0_12 = arith.constant 0 : index
      %16 = vector.load %arg4[%c0_11, %c0_12] : memref<8x128xf32, #tpu.memory_space<vmem>>, vector<8x128xf32>
      %cst = arith.constant dense<0xFF800000> : vector<8xf32>
      %17 = vector.multi_reduction <maximumf>, %16, %cst [1] : vector<8x128xf32> to vector<8xf32>
      %18 = vector.shape_cast %17 : vector<8xf32> to vector<8x1xf32>
      %c0_13 = arith.constant 0 : index
      %c0_14 = arith.constant 0 : index
      %19 = vector.load %arg3[%c0_13, %c0_14] : memref<8x1xf32, #tpu.memory_space<vmem>>, vector<8x1xf32>
      tpu.vector_store %arg3[%c0_13, %c0_14], %18 {strides = array<i32>} : memref<8x1xf32, #tpu.memory_space<vmem>>, vector<8x1xf32>,
    } else {
    }
    return
  }
  func.func @transform_0(%arg0: i32, %arg1: i32) -> (i32, i32) {
    %c0_i32 = arith.constant 0 : i32
    return %arg0, %arg1 : i32, i32
  }
  func.func @transform_1(%arg0: i32, %arg1: i32) -> (i32, i32) {
    %c0_i32 = arith.constant 0 : i32
    %c0_i32_0 = arith.constant 0 : i32
    return %arg0, %c0_i32 : i32, i32
  }
}

</mosaic_0001>

<bundles_post_ra>
// kernel: tpu_custom_call.1
= control target key start
LH: loop header
LB: loop body
LE: loop exit
PB: predicated region body
PF: predicated region fallthrough
CT: control target
= control target key end

     0   :  { %6 = vsyncpa [#allocation4], 0  ;;  %s73_s6 = smov [#allocation3]   ;;  %s99_s0 = inlined_call_operand.hbm [shape: f32[8,512], index: 0, kind: input, shape index: {}]   ;;  %s100_s1 = inlined_call_operand.vmem [shape: f32[8,1], index: 1, kind: output, shape index: {}]  }
   0x1   :  { %s13_s7 = sshll.u32 %s73_s6, 4  ;;  %s49_s10 = scalar_lea.hbm %s99_s0, 512  ;;  %s14_s7 = int_to_ptr.vmem [resolvable:$true] %s13_s7 }
   0x2   :  { %p50_p0 = scmp.ne.s32.totalorder %s99_s0, %s49_s10  ;;  %p53_p1 = scmp.lt.u32.totalorder %s49_s10, %s99_s0 }
   0x4   :  { %p55_p2 = pnand %p53_p1, %p50_p0 }
   0x6   :  { %58 = shalt.err (!%p55_p2)
}
   0x7   :  { %s59_s15 = scalar_lea.vmem %s14_s7, 512  ;;  %p64_p4 = scmp.lt.s32.totalorder %s14_s7, %s14_s7 }
   0x8   :  { %p60_p3 = scmp.ne.s32.totalorder %s14_s7, %s59_s15  ;;  %p65_p5 = scmp.lt.s32.totalorder %s59_s15, %s59_s15 }
   0xa   :  { %p66_p6 = por %p65_p5, %p64_p4 }
   0xc   :  { %p67_p7 = pnand %p66_p6, %p60_p3 }
   0xe   :  { %70 = shalt.err (!%p67_p7)
}
   0xf   :  { %16 = dma.hbm_to_vmem [thread:$0]  %s99_s0, 512, %s14_s7, [#allocation4]  }
  0x10   :  { %71 = dma.done.wait [#allocation4], 512  }
  0x11   :  { %72 = vsyncadd [#allocation4], 4294966784  ;;  %v25_v0 = vld [vmem:[#allocation3] sm:$0xff]  ;;  %v26_v1 = vld [vmem:[#allocation3 + $0x8] sm:$0xff]  ;;  %vm41_vm0 = vcmask 7168  }
  0x12   :  { %v28_v2 = vld [vmem:[#allocation3 + $0x10] sm:$0xff]  ;;  %v27_v3 = vmax.f32 %v25_v0, %v26_v1  ;;  %v30_v4 = vld [vmem:[#allocation3 + $0x18] sm:$0xff] }
  0x14   :  { %v29_v5 = vmax.f32 %v27_v3, %v28_v2 }
  0x16   :  { %v31_v6 = vmax.f32 %v29_v5, %v30_v4 }
  0x18   :  { %39 = vmax.xlane.f32.xlu0 %v31_v6 }
  0xa5   :  { %v40_v7 = vpop.xlane.xlu0 %39 }
  0xa6   :  { %42 = vst.msk [vmem:[%s100_s1] sm:$0xff] %vm41_vm0, %v40_v7 }
  0xa7   :  { %47 = vsyncpa [#allocation4], 1 }

</bundles_post_ra>
